<compile_context>
chip_gen: v7x
topology: tpu7x:2x2x1
jax: 0.10.0
libtpu: 0.0.40
codegen_flags: <defaults>
</compile_context>

<pallas_src>
import functools

import jax
import jax.numpy as jnp
from jax import lax
from jax.experimental import pallas as pl
from jax.experimental.pallas import tpu as pltpu

_NUM_BITS = 8
_QMIN = -float(2 ** _NUM_BITS)          # -256.0  (exactly as the torch reference)
_QMAX = float(2 ** (_NUM_BITS - 1) - 1)  # 127.0


def _round_up(v: int, m: int) -> int:
    return (v + m - 1) // m * m


def _frac_bit(absmax):
    """frac = 7 - round(log2(absmax)); guarded against an all-zero tensor."""
    safe = jnp.maximum(absmax, jnp.finfo(jnp.float32).tiny)
    frac = (_NUM_BITS - 1) - jnp.round(jnp.log2(safe))
    return jnp.where(absmax > 0.0, frac, 0.0).astype(jnp.float32)


# --------------------------------------------------------------------------- #
# Kernel 1: fused fake-quant(x) / fake-quant(W) + matmul + bias epilogue.
# --------------------------------------------------------------------------- #
def _qlinear_matmul_kernel(scales_ref, x_ref, w_ref, b_ref, out_ref, acc_ref):
    k = pl.program_id(2)

    @pl.when(k == 0)
    def _():
        acc_ref[...] = jnp.zeros_like(acc_ref)

    # Per-tensor power-of-two scales (f32 scalars in SMEM).
    sx, inv_sx = scales_ref[0], scales_ref[1]
    sw, inv_sw = scales_ref[2], scales_ref[3]

    # Fused fake-quant of the tiles (VPU work, hides under the MXU). No rounding.
    x_fq = jnp.clip(x_ref[...] * sx, _QMIN, _QMAX) * inv_sx     # (tm, tk)
    w_fq = jnp.clip(w_ref[...] * sw, _QMIN, _QMAX) * inv_sw     # (tn, tk)
    # TODO(synk): on v5e, casting x_fq / w_fq to bf16 here would ~2x MXU
    # throughput; kept f32 to match the reference bit-for-bit ("no rounding").

    # Contract on K for both operands (W stays [N, K] -> no in-kernel .T).
    acc_ref[...] += lax.dot_general(
        x_fq, w_fq,
        dimension_numbers=(((1,), (1,)), ((), ())),
        preferred_element_type=jnp.float32,
    )

    @pl.when(k == pl.num_programs(2) - 1)
    def _():
        out_ref[...] = (acc_ref[...] + b_ref[...]).astype(out_ref.dtype)


# --------------------------------------------------------------------------- #
# Kernel 2: elementwise fake-quant of the output (scale comes from a global max).
# --------------------------------------------------------------------------- #
def _fakequant_kernel(scales_ref, y_ref, out_ref):
    s, inv_s = scales_ref[0], scales_ref[1]
    out_ref[...] = (jnp.clip(y_ref[...] * s, _QMIN, _QMAX) * inv_s).astype(
        out_ref.dtype)


# --------------------------------------------------------------------------- #
# Wrapper
# --------------------------------------------------------------------------- #
@jax.jit
def qlinear_forward(x, w, b):
    """y = FakeQuant( FakeQuant(x) @ FakeQuant(W).T + b ), all float32."""
    x = jnp.asarray(x, jnp.float32)
    w = jnp.asarray(w, jnp.float32)
    b = jnp.asarray(b, jnp.float32)

    B, K = x.shape
    N, K2 = w.shape
    assert K == K2, "in_features mismatch"
    b2 = b.reshape(1, N)

    # ---- per-tensor scales: cheap global XLA reductions (scalar each) -------
    frac_x = _frac_bit(jnp.max(jnp.abs(x)))
    frac_w = _frac_bit(jnp.max(jnp.abs(w)))
    scales_xw = jnp.stack(
        [jnp.exp2(frac_x), jnp.exp2(-frac_x),
         jnp.exp2(frac_w), jnp.exp2(-frac_w)]).astype(jnp.float32)

    # ---- MXU-aligned tiles, padded small dims (lane-dense output) -----------
    tm = 256 if B > 256 else _round_up(max(B, 8), 8)
    tn = 256 if N > 256 else _round_up(max(N, 128), 128)
    tk = 512 if K > 512 else _round_up(max(K, 128), 128)
    Mp, Np, Kp = _round_up(B, tm), _round_up(N, tn), _round_up(K, tk)

    xp = jnp.pad(x, ((0, Mp - B), (0, Kp - K)))
    wp = jnp.pad(w, ((0, Np - N), (0, Kp - K)))
    bp = jnp.pad(b2, ((0, 0), (0, Np - N)))

    grid = (Mp // tm, Np // tn, Kp // tk)

    y_p = pl.pallas_call(
        _qlinear_matmul_kernel,
        out_shape=jax.ShapeDtypeStruct((Mp, Np), jnp.float32),
        grid_spec=pltpu.PrefetchScalarGridSpec(
            num_scalar_prefetch=0,
            grid=grid,
            in_specs=[
                pl.BlockSpec(memory_space=pltpu.MemorySpace.SMEM),   # scales (4,)
                pl.BlockSpec((tm, tk), lambda i, j, k: (i, k)),      # x  [B, K]
                pl.BlockSpec((tn, tk), lambda i, j, k: (j, k)),      # W  [N, K]
                pl.BlockSpec((1, tn), lambda i, j, k: (0, j)),       # bias [1, N]
            ],
            out_specs=pl.BlockSpec((tm, tn), lambda i, j, k: (i, j)),
            scratch_shapes=[pltpu.VMEM((tm, tn), jnp.float32)],
        ),
        compiler_params=pltpu.CompilerParams(
            dimension_semantics=("parallel", "parallel", "arbitrary"),
        ),
    )(scales_xw, xp, wp, bp)

    # ---- output fake-quant: global |y| max over the REAL (unpadded) output --
    frac_y = _frac_bit(jnp.max(jnp.abs(y_p[:B, :N])))
    scales_y = jnp.stack([jnp.exp2(frac_y), jnp.exp2(-frac_y)]).astype(jnp.float32)

    y_fq_p = pl.pallas_call(
        _fakequant_kernel,
        out_shape=jax.ShapeDtypeStruct((Mp, Np), jnp.float32),
        grid_spec=pltpu.PrefetchScalarGridSpec(
            num_scalar_prefetch=0,
            grid=(Mp // tm, Np // tn),
            in_specs=[
                pl.BlockSpec(memory_space=pltpu.MemorySpace.SMEM),   # scales (2,)
                pl.BlockSpec((tm, tn), lambda i, j: (i, j)),
            ],
            out_specs=pl.BlockSpec((tm, tn), lambda i, j: (i, j)),
        ),
        compiler_params=pltpu.CompilerParams(
            dimension_semantics=("parallel", "parallel"),
        ),
    )(scales_y, y_p)

    return y_fq_p[:B, :N]


# --------------------------------------------------------------------------- #
# Pure-JAX reference (mirrors the PyTorch module) + smoke test
# --------------------------------------------------------------------------- #
def _fake_quant_ref(v):
    frac = _frac_bit(jnp.max(jnp.abs(v)))
    return jnp.clip(v * jnp.exp2(frac), _QMIN, _QMAX) * jnp.exp2(-frac)


def qlinear_forward_ref(x, w, b):
    x_fq = _fake_quant_ref(x)
    w_fq = _fake_quant_ref(w)
    y = jnp.dot(x_fq, w_fq.T, precision=lax.Precision.HIGHEST) + b[None, :]
    return _fake_quant_ref(y)


if __name__ == "__main__":
    key = jax.random.PRNGKey(0)
    kx, kw, kb = jax.random.split(key, 3)

    batch, in_features, out_features = 6, 32, 24
    x = jax.random.normal(kx, (batch, in_features), jnp.float32)
    w = jax.random.normal(kw, (out_features, in_features), jnp.float32) * 0.3
    b = jax.random.normal(kb, (out_features,), jnp.float32) * 0.1

    out = jax.block_until_ready(qlinear_forward(x, w, b))
    ref = jax.block_until_ready(qlinear_forward_ref(x, w, b))

    assert out.shape == (batch, out_features)
    assert bool(jnp.all(jnp.isfinite(out)))
    max_err = float(jnp.max(jnp.abs(out - ref)))
    assert max_err < 1e-2, f"mismatch vs reference: max abs err = {max_err}"

    print("KERNEL_OK")
</pallas_src>

<mosaic_0001>
module attributes {stable_mosaic.version = 11 : i64} {
  func.func @_fakequant_kernel(%arg0: i32, %arg1: i32, %arg2: memref<2xf32, #tpu.memory_space<smem>>, %arg3: memref<8x128xf32, #tpu.memory_space<vmem>>, %arg4: memref<8x128xf32, #tpu.memory_space<vmem>>) attributes {dimension_semantics = [#tpu.dimension_semantics<parallel>, #tpu.dimension_semantics<parallel>], iteration_bounds = array<i64: 1, 1>, scalar_prefetch = 0 : i64, scratch_operands = 0 : i64, tpu.core_type = #tpu.core_type<tc>, window_params = [{transform_indices = @transform_0, window_bounds = array<i64: 2>}, {transform_indices = @transform_1, window_bounds = array<i64: 8, 128>}, {transform_indices = @transform_2, window_bounds = array<i64: 8, 128>}]} {
    %c0 = arith.constant 0 : index
    %0 = memref.load %arg2[%c0] : memref<2xf32, #tpu.memory_space<smem>>
    %c1 = arith.constant 1 : index
    %1 = memref.load %arg2[%c1] : memref<2xf32, #tpu.memory_space<smem>>
    %c0_0 = arith.constant 0 : index
    %c0_1 = arith.constant 0 : index
    %2 = vector.load %arg3[%c0_0, %c0_1] : memref<8x128xf32, #tpu.memory_space<vmem>>, vector<8x128xf32>
    %3 = vector.broadcast %0 : f32 to vector<8x128xf32>
    %4 = arith.mulf %2, %3 : vector<8x128xf32>
    %cst = arith.constant -2.560000e+02 : f32
    %cst_2 = arith.constant 1.270000e+02 : f32
    %5 = vector.broadcast %cst : f32 to vector<8x128xf32>
    %6 = arith.maximumf %5, %4 : vector<8x128xf32>
    %7 = vector.broadcast %cst_2 : f32 to vector<8x128xf32>
    %8 = arith.minimumf %7, %6 : vector<8x128xf32>
    %9 = vector.broadcast %1 : f32 to vector<8x128xf32>
    %10 = arith.mulf %8, %9 : vector<8x128xf32>
    %c0_3 = arith.constant 0 : index
    %c0_4 = arith.constant 0 : index
    %11 = vector.load %arg4[%c0_3, %c0_4] : memref<8x128xf32, #tpu.memory_space<vmem>>, vector<8x128xf32>
    tpu.vector_store %arg4[%c0_3, %c0_4], %10 {strides = array<i32>} : memref<8x128xf32, #tpu.memory_space<vmem>>, vector<8x128xf32>,
    return
  }
  func.func @transform_0(%arg0: i32, %arg1: i32) -> i32 {
    %c0_i32 = arith.constant 0 : i32
    %c0_i32_0 = arith.constant 0 : i32
    return %c0_i32 : i32
  }
  func.func @transform_1(%arg0: i32, %arg1: i32) -> (i32, i32) {
    %c0_i32 = arith.constant 0 : i32
    return %arg0, %arg1 : i32, i32
  }
  func.func @transform_2(%arg0: i32, %arg1: i32) -> (i32, i32) {
    %c0_i32 = arith.constant 0 : i32
    return %arg0, %arg1 : i32, i32
  }
}

module attributes {stable_mosaic.version = 11 : i64} {
  func.func @_qlinear_matmul_kernel(%arg0: i32, %arg1: i32, %arg2: i32, %arg3: memref<4xf32, #tpu.memory_space<smem>>, %arg4: memref<8x128xf32, #tpu.memory_space<vmem>>, %arg5: memref<128x128xf32, #tpu.memory_space<vmem>>, %arg6: memref<1x128xf32, #tpu.memory_space<vmem>>, %arg7: memref<8x128xf32, #tpu.memory_space<vmem>>, %arg8: memref<8x128xf32, #tpu.memory_space<vmem>>) attributes {dimension_semantics = [#tpu.dimension_semantics<parallel>, #tpu.dimension_semantics<parallel>, #tpu.dimension_semantics<arbitrary>], iteration_bounds = array<i64: 1, 1, 1>, scalar_prefetch = 0 : i64, scratch_operands = 1 : i64, tpu.core_type = #tpu.core_type<tc>, window_params = [{transform_indices = @transform_0, window_bounds = array<i64: 4>}, {transform_indices = @transform_1, window_bounds = array<i64: 8, 128>}, {transform_indices = @transform_2, window_bounds = array<i64: 128, 128>}, {transform_indices = @transform_3, window_bounds = array<i64: 1, 128>}, {transform_indices = @transform_4, window_bounds = array<i64: 8, 128>}]} {
    %c0_i32 = arith.constant 0 : i32
    %0 = arith.cmpi eq, %arg2, %c0_i32 : i32
    %1 = arith.extui %0 : i1 to i32
    %c0_i32_0 = arith.constant 0 : i32
    %2 = arith.cmpi ne, %1, %c0_i32_0 : i32
    scf.if %2 {
      %cst_15 = arith.constant 0.000000e+00 : f32
      %32 = vector.broadcast %cst_15 : f32 to vector<8x128xf32>
      %c0_16 = arith.constant 0 : index
      %c0_17 = arith.constant 0 : index
      %33 = vector.load %arg8[%c0_16, %c0_17] : memref<8x128xf32, #tpu.memory_space<vmem>>, vector<8x128xf32>
      tpu.vector_store %arg8[%c0_16, %c0_17], %32 {strides = array<i32>} : memref<8x128xf32, #tpu.memory_space<vmem>>, vector<8x128xf32>,
    } else {
    }
    %c0 = arith.constant 0 : index
    %3 = memref.load %arg3[%c0] : memref<4xf32, #tpu.memory_space<smem>>
    %c1 = arith.constant 1 : index
    %4 = memref.load %arg3[%c1] : memref<4xf32, #tpu.memory_space<smem>>
    %c2 = arith.constant 2 : index
    %5 = memref.load %arg3[%c2] : memref<4xf32, #tpu.memory_space<smem>>
    %c3 = arith.constant 3 : index
    %6 = memref.load %arg3[%c3] : memref<4xf32, #tpu.memory_space<smem>>
    %c0_1 = arith.constant 0 : index
    %c0_2 = arith.constant 0 : index
    %7 = vector.load %arg4[%c0_1, %c0_2] : memref<8x128xf32, #tpu.memory_space<vmem>>, vector<8x128xf32>
    %8 = vector.broadcast %3 : f32 to vector<8x128xf32>
    %9 = arith.mulf %7, %8 : vector<8x128xf32>
    %cst = arith.constant -2.560000e+02 : f32
    %cst_3 = arith.constant 1.270000e+02 : f32
    %10 = vector.broadcast %cst : f32 to vector<8x128xf32>
    %11 = arith.maximumf %10, %9 : vector<8x128xf32>
    %12 = vector.broadcast %cst_3 : f32 to vector<8x128xf32>
    %13 = arith.minimumf %12, %11 : vector<8x128xf32>
    %14 = vector.broadcast %4 : f32 to vector<8x128xf32>
    %15 = arith.mulf %13, %14 : vector<8x128xf32>
    %c0_4 = arith.constant 0 : index
    %c0_5 = arith.constant 0 : index
    %16 = vector.load %arg5[%c0_4, %c0_5] : memref<128x128xf32, #tpu.memory_space<vmem>>, vector<128x128xf32>
    %17 = vector.broadcast %5 : f32 to vector<128x128xf32>
    %18 = arith.mulf %16, %17 : vector<128x128xf32>
    %cst_6 = arith.constant -2.560000e+02 : f32
    %cst_7 = arith.constant 1.270000e+02 : f32
    %19 = vector.broadcast %cst_6 : f32 to vector<128x128xf32>
    %20 = arith.maximumf %19, %18 : vector<128x128xf32>
    %21 = vector.broadcast %cst_7 : f32 to vector<128x128xf32>
    %22 = arith.minimumf %21, %20 : vector<128x128xf32>
    %23 = vector.broadcast %6 : f32 to vector<128x128xf32>
    %24 = arith.mulf %22, %23 : vector<128x128xf32>
    %c0_8 = arith.constant 0 : index
    %c0_9 = arith.constant 0 : index
    %25 = vector.load %arg8[%c0_8, %c0_9] : memref<8x128xf32, #tpu.memory_space<vmem>>, vector<8x128xf32>
    %cst_10 = arith.constant dense<0.000000e+00> : vector<8x128xf32>
    %26 = tpu.matmul %15, %24, %cst_10 {dimension_numbers = #tpu.dot_dimension_numbers<[1], [1], [0], [0], [0, 0, 1, 0], [], []>} : vector<8x128xf32>, vector<128x128xf32>, vector<8x128xf32> -> vector<8x128xf32>
    %27 = arith.addf %25, %26 : vector<8x128xf32>
    %c0_11 = arith.constant 0 : index
    %c0_12 = arith.constant 0 : index
    %28 = vector.load %arg8[%c0_11, %c0_12] : memref<8x128xf32, #tpu.memory_space<vmem>>, vector<8x128xf32>
    tpu.vector_store %arg8[%c0_11, %c0_12], %27 {strides = array<i32>} : memref<8x128xf32, #tpu.memory_space<vmem>>, vector<8x128xf32>,
    %c0_i32_13 = arith.constant 0 : i32
    %29 = arith.cmpi eq, %arg2, %c0_i32_13 : i32
    %30 = arith.extui %29 : i1 to i32
    %c0_i32_14 = arith.constant 0 : i32
    %31 = arith.cmpi ne, %30, %c0_i32_14 : i32
    scf.if %31 {
      %c0_15 = arith.constant 0 : index
      %c0_16 = arith.constant 0 : index
      %32 = vector.load %arg8[%c0_15, %c0_16] : memref<8x128xf32, #tpu.memory_space<vmem>>, vector<8x128xf32>
      %c0_17 = arith.constant 0 : index
      %c0_18 = arith.constant 0 : index
      %33 = vector.load %arg6[%c0_17, %c0_18] : memref<1x128xf32, #tpu.memory_space<vmem>>, vector<1x128xf32>
      %34 = vector.broadcast %33 : vector<1x128xf32> to vector<8x128xf32>
      %35 = arith.addf %32, %34 : vector<8x128xf32>
      %c0_19 = arith.constant 0 : index
      %c0_20 = arith.constant 0 : index
      %36 = vector.load %arg7[%c0_19, %c0_20] : memref<8x128xf32, #tpu.memory_space<vmem>>, vector<8x128xf32>
      tpu.vector_store %arg7[%c0_19, %c0_20], %35 {strides = array<i32>} : memref<8x128xf32, #tpu.memory_space<vmem>>, vector<8x128xf32>,
    } else {
    }
    return
  }
  func.func @transform_0(%arg0: i32, %arg1: i32, %arg2: i32) -> i32 {
    %c0_i32 = arith.constant 0 : i32
    %c0_i32_0 = arith.constant 0 : i32
    return %c0_i32 : i32
  }
  func.func @transform_1(%arg0: i32, %arg1: i32, %arg2: i32) -> (i32, i32) {
    %c0_i32 = arith.constant 0 : i32
    return %arg0, %arg2 : i32, i32
  }
  func.func @transform_2(%arg0: i32, %arg1: i32, %arg2: i32) -> (i32, i32) {
    %c0_i32 = arith.constant 0 : i32
    return %arg1, %arg2 : i32, i32
  }
  func.func @transform_3(%arg0: i32, %arg1: i32, %arg2: i32) -> (i32, i32) {
    %c0_i32 = arith.constant 0 : i32
    %c0_i32_0 = arith.constant 0 : i32
    return %c0_i32, %arg1 : i32, i32
  }
  func.func @transform_4(%arg0: i32, %arg1: i32, %arg2: i32) -> (i32, i32) {
    %c0_i32 = arith.constant 0 : i32
    return %arg0, %arg1 : i32, i32
  }
}

</mosaic_0001>

<bundles_post_ra>
// kernel: qlinear_forward.3
= control target key start
LH: loop header
LB: loop body
LE: loop exit
PB: predicated region body
PF: predicated region fallthrough
CT: control target
= control target key end

     0   :  { %7 = vsyncpa [#allocation4], 0  ;;  %s126_s0 = inlined_call_operand.vmem [shape: f32[2], index: 0, kind: input, shape index: {}]   ;;  %s127_s1 = inlined_call_operand.vmem [shape: f32[8,128], index: 1, kind: input, shape index: {}]   ;;  %s128_s2 = inlined_call_operand.hbm [shape: f32[8,128], index: 2, kind: output, shape index: {}]  }
   0x1   :  { %8 = vsyncpa [#allocation3], 0  ;;  %s15_s11 = sshll.u32 %s126_s0, 4  ;;  %s16_s11 = int_to_ptr.vmem [resolvable:$true] %s15_s11 }
   0x2   :  { %s53_s12 = scalar_lea.vmem %s16_s11, 16  ;;  %p58_p1 = scmp.lt.s32.totalorder %s16_s11, %s16_s11 }
   0x3   :  { %p54_p0 = scmp.ne.s32.totalorder %s16_s11, %s53_s12  ;;  %p59_p2 = scmp.lt.s32.totalorder %s53_s12, %s53_s12 }
   0x5   :  { %p60_p3 = por %p59_p2, %p58_p1 }
   0x7   :  { %p61_p4 = pnand %p60_p3, %p54_p0 }
   0x9   :  { %64 = shalt.err (!%p61_p4)
}
   0xa   :  { %s91_s13 = smov [#allocation2]  }
   0xb   :  { %18 = dma.vmem_to_smem %s16_s11, 16, %s91_s13, [#allocation4]  }
   0xc   :  { %87 = dma.done.wait [#allocation4], 16  }
   0xd   :  { %88 = vsyncadd [#allocation4], 4294967280 }
   0xe   :  { %24 = sfence }
   0xf   :  { %s25_s14 = sld [smem:[#allocation2]]  ;;  %s50_s15 = sld [smem:[#allocation2 + $0x1]]  ;;  %v27_v0 = vld [vmem:[%s127_s1] sm:$0xff] }
  0x10   :  { %s92_s0 = smov [#allocation5]  }
  0x11   :  { %s41_s18 = sshll.u32 %s92_s0, 4  ;;  %s42_s18 = int_to_ptr.vmem [resolvable:$true] %s41_s18 }
  0x12   :  { %s65_s19 = scalar_lea.vmem %s42_s18, 128  ;;  %p70_p6 = scmp.lt.s32.totalorder %s42_s18, %s42_s18 }
  0x13   :  { %p66_p5 = scmp.ne.s32.totalorder %s42_s18, %s65_s19  ;;  %p71_p7 = scmp.lt.s32.totalorder %s65_s19, %s65_s19 }
  0x15   :  { %v28_v1 = vstv %s25_s14  ;;  %v32_v4 = vstv %s50_s15  ;;  %p72_p8 = por %p71_p7, %p70_p6 }
  0x16   :  { %v29_v2 = vmul.f32 %v28_v1, %v27_v0 }
  0x17   :  { %p73_p9 = pnand %p72_p8, %p66_p5 }
  0x18   :  { %v30_v3 = vmax.f32 %v29_v2, -256.0 }
  0x1a   :  { %v31_v5 = vmin.f32 %v30_v3, 127.0 }
  0x1c   :  { %v33_v6 = vmul.f32 %v32_v4, %v31_v5 }
  0x1e   :  { %34 = vst [vmem:[#allocation5] sm:$0xff] %v33_v6 }
  0x1f   :  { %76 = shalt.err (!%p73_p9)
}
  0x20   :  { %s77_s1 = scalar_lea.hbm %s128_s2, 128 }
  0x21   :  { %p78_p10 = scmp.ne.s32.totalorder %s128_s2, %s77_s1  ;;  %p81_p11 = scmp.lt.u32.totalorder %s77_s1, %s128_s2 }
  0x23   :  { %p83_p12 = pnand %p81_p11, %p78_p10 }
  0x25   :  { %86 = shalt.err (!%p83_p12)
}
  0x26   :  { %44 = dma.vmem_to_hbm [thread:$0]  %s42_s18, 128, %s128_s2, [#allocation3]  }
  0x27   :  { %89 = dma.done.wait [#allocation3], 128  }
  0x28   :  { %90 = vsyncadd [#allocation3], 4294967168 }
  0x29   :  { %48 = vsyncpa [#allocation3], 1 }
  0x2a   :  { %49 = vsyncpa [#allocation4], 1 }

// kernel: qlinear_forward.2
= control target key start
LH: loop header
LB: loop body
LE: loop exit
PB: predicated region body
PF: predicated region fallthrough
CT: control target
= control target key end

     0   :  { %9 = vsyncpa [#allocation4], 0  ;;  %s450_s0 = inlined_call_operand.vmem [shape: f32[4], index: 0, kind: input, shape index: {}]   ;;  %s451_s1 = inlined_call_operand.vmem [shape: f32[8,128], index: 1, kind: input, shape index: {}]   ;;  %s452_s2 = inlined_call_operand.vmem [shape: f32[128,128], index: 2, kind: input, shape index: {}]   ;;  %s453_s3 = inlined_call_operand.vmem [shape: f32[1,128], index: 3, kind: input, shape index: {}]   ;;  %s454_s4 = inlined_call_operand.vmem [shape: f32[8,128], index: 4, kind: output, shape index: {}]  }
   0x1   :  { %s16_s17 = sshll.u32 %s450_s0, 4  ;;  %s17_s17 = int_to_ptr.vmem [resolvable:$true] %s16_s17 }
   0x2   :  { %s303_s18 = scalar_lea.vmem %s17_s17, 16  ;;  %p308_p1 = scmp.lt.s32.totalorder %s17_s17, %s17_s17 }
   0x3   :  { %p304_p0 = scmp.ne.s32.totalorder %s17_s17, %s303_s18  ;;  %p309_p2 = scmp.lt.s32.totalorder %s303_s18, %s303_s18 }
   0x5   :  { %p310_p3 = por %p309_p2, %p308_p1 }
   0x7   :  { %p311_p4 = pnand %p310_p3, %p304_p0 }
   0x9   :  { %314 = shalt.err (!%p311_p4)
}
   0xa   :  { %s317_s19 = smov [#allocation3]  }
   0xb   :  { %19 = dma.vmem_to_smem %s17_s17, 16, %s317_s19, [#allocation4]  }
   0xc   :  { %315 = dma.done.wait [#allocation4], 16  }
   0xd   :  { %316 = vsyncadd [#allocation4], 4294967280 }
   0xe   :  { %29 = sfence }
   0xf   :  { %s220_s20 = sld [smem:[#allocation3 + $0x2]]  ;;  %v318_v0 = vmov 0.0|0.0   ;;  %s221_s21 = sld [smem:[#allocation3 + $0x3]]  ;;  %vm319_vm0 = vmmov 0   ;;  %v320_v1 = vmov 0.0   ;;  %v46_v2 = vld [vmem:[%s452_s2] sm:$0xff] }
  0x10   :  { %275 = vmatprep.subr.bf16.mxu0 %v318_v0  ;;  %272 = vmatprep.mubr.msk.f32.mxu0 %vm319_vm0, %v320_v1  ;;  %v47_v3 = vld [vmem:[%s452_s2 + $0x8] sm:$0xff]  ;;  %v48_v4 = vld [vmem:[%s452_s2 + $0x10] sm:$0xff]  ;;  %v49_v5 = vld [vmem:[%s452_s2 + $0x18] sm:$0xff]  ;;  %s35_s26 = sld [smem:[#allocation3]]  ;;  %s219_s28 = sld [smem:[#allocation3 + $0x1]] }
  0x11   :  { %v50_v15 = vld [vmem:[%s452_s2 + $0x20] sm:$0xff]  ;;  %v51_v16 = vld [vmem:[%s452_s2 + $0x28] sm:$0xff]  ;;  %v52_v31 = vld [vmem:[%s452_s2 + $0x30] sm:$0xff] }
  0x12   :  { %v53_v32 = vld [vmem:[%s452_s2 + $0x38] sm:$0xff]  ;;  %v54_v42 = vld [vmem:[%s452_s2 + $0x40] sm:$0xff]  ;;  %v55_v43 = vld [vmem:[%s452_s2 + $0x48] sm:$0xff] }
  0x13   :  { %v56_v53 = vld [vmem:[%s452_s2 + $0x50] sm:$0xff]  ;;  %v57_v54 = vld [vmem:[%s452_s2 + $0x58] sm:$0xff]  ;;  %v58_v1 = vld [vmem:[%s452_s2 + $0x60] sm:$0xff] }
  0x15   :  { %v362_v6 = vstv %s220_s20  ;;  %v374_v17 = vstv %s221_s21 }
  0x16   :  { %v63_v7 = vmul.f32 %v362_v6, %v46_v2  ;;  %v64_v8 = vmul.f32 %v362_v6, %v47_v3  ;;  %v65_v9 = vmul.f32 %v362_v6, %v48_v4  ;;  %v66_v10 = vmul.f32 %v362_v6, %v49_v5  ;;  %v59_v2 = vld [vmem:[%s452_s2 + $0x68] sm:$0xff] }
  0x17   :  { %v67_v20 = vmul.f32 %v362_v6, %v50_v15  ;;  %v68_v21 = vmul.f32 %v362_v6, %v51_v16  ;;  %v69_v33 = vmul.f32 %v362_v6, %v52_v31  ;;  %v70_v34 = vmul.f32 %v362_v6, %v53_v32 }
  0x18   :  { %v79_v11 = vmax.f32 %v63_v7, -256.0  ;;  %v80_v12 = vmax.f32 %v64_v8, -256.0  ;;  %v81_v13 = vmax.f32 %v65_v9, -256.0  ;;  %v82_v14 = vmax.f32 %v66_v10, -256.0 }
  0x19   :  { %v83_v29 = vmax.f32 %v67_v20, -256.0  ;;  %v84_v30 = vmax.f32 %v68_v21, -256.0  ;;  %v85_v38 = vmax.f32 %v69_v33, -256.0  ;;  %v86_v39 = vmax.f32 %v70_v34, -256.0 }
  0x1a   :  { %v95_v18 = vmin.f32 %v79_v11, 127.0  ;;  %v96_v19 = vmin.f32 %v80_v12, 127.0  ;;  %v97_v24 = vmin.f32 %v81_v13, 127.0  ;;  %v98_v25 = vmin.f32 %v82_v14, 127.0  ;;  %v60_v13 = vld [vmem:[%s452_s2 + $0x70] sm:$0xff]  ;;  %v61_v14 = vld [vmem:[%s452_s2 + $0x78] sm:$0xff] }
  0x1b   :  { %v99_v36 = vmin.f32 %v83_v29, 127.0  ;;  %v100_v37 = vmin.f32 %v84_v30, 127.0  ;;  %v101_v44 = vmin.f32 %v85_v38, 127.0  ;;  %v102_v45 = vmin.f32 %v86_v39, 127.0 }
  0x1c   :  { %v112_v22 = vmul.f32 %v374_v17, %v95_v18  ;;  %v113_v23 = vmul.f32 %v374_v17, %v96_v19  ;;  %v114_v27 = vmul.f32 %v374_v17, %v97_v24  ;;  %v115_v28 = vmul.f32 %v374_v17, %v98_v25 }
  0x1d   :  { %v116_v40 = vmul.f32 %v374_v17, %v99_v36  ;;  %v117_v41 = vmul.f32 %v374_v17, %v100_v37  ;;  %v71_v47 = vmul.f32 %v362_v6, %v54_v42  ;;  %v72_v48 = vmul.f32 %v362_v6, %v55_v43  ;;  %v222_v37 = vld [vmem:[%s453_s3] ss:$0 sm:$0xff] }
  0x1e   :  { %v276_v26 = vpack.c.bf16 %v113_v23, %v112_v22  ;;  %v279_v35 = vpack.c.bf16 %v115_v28, %v114_v27  ;;  %v118_v49 = vmul.f32 %v374_v17, %v101_v44  ;;  %v119_v50 = vmul.f32 %v374_v17, %v102_v45  ;;  %v39_v28 = vld [vmem:[%s451_s1] sm:$0xff] }
  0x1f   :  { %v282_v46 = vpack.c.bf16 %v117_v41, %v116_v40  ;;  %v87_v51 = vmax.f32 %v71_v47, -256.0  ;;  %v88_v52 = vmax.f32 %v72_v48, -256.0  ;;  %v73_v58 = vmul.f32 %v362_v6, %v56_v53 }
  0x20   :  { %277 = vmatpush3.bf16.xpose.msra.mxu0 %v276_v26  ;;  %v285_v55 = vpack.c.bf16 %v119_v50, %v118_v49  ;;  %v74_v59 = vmul.f32 %v362_v6, %v57_v54  ;;  %v75_v3 = vmul.f32 %v362_v6, %v58_v1  ;;  %v76_v8 = vmul.f32 %v362_v6, %v59_v2 }
  0x21   :  { %278 = vmatprep.subr.bf16.mxu0 %v318_v0  ;;  %v103_v56 = vmin.f32 %v87_v51, 127.0  ;;  %v104_v57 = vmin.f32 %v88_v52, 127.0  ;;  %v89_v62 = vmax.f32 %v73_v58, -256.0  ;;  %v77_v15 = vmul.f32 %v362_v6, %v60_v13 }
  0x22   :  { %v90_v63 = vmax.f32 %v74_v59, -256.0  ;;  %v91_v11 = vmax.f32 %v75_v3, -256.0  ;;  %v92_v12 = vmax.f32 %v76_v8, -256.0  ;;  %v78_v20 = vmul.f32 %v362_v6, %v61_v14 }
  0x23   :  { %v120_v60 = vmul.f32 %v374_v17, %v103_v56  ;;  %v121_v61 = vmul.f32 %v374_v17, %v104_v57  ;;  %v105_v5 = vmin.f32 %v89_v62, 127.0  ;;  %v93_v23 = vmax.f32 %v77_v15, -256.0 }
  0x24   :  { %v106_v7 = vmin.f32 %v90_v63, 127.0  ;;  %v107_v18 = vmin.f32 %v91_v11, 127.0  ;;  %v108_v19 = vmin.f32 %v92_v12, 127.0  ;;  %v94_v24 = vmax.f32 %v78_v20, -256.0 }
  0x25   :  { %v288_v4 = vpack.c.bf16 %v121_v61, %v120_v60  ;;  %v122_v9 = vmul.f32 %v374_v17, %v105_v5  ;;  %v109_v26 = vmin.f32 %v93_v23, 127.0  ;;  %v40_v29 = vstv %s35_s26 }
  0x26   :  { %v123_v10 = vmul.f32 %v374_v17, %v106_v7  ;;  %v124_v21 = vmul.f32 %v374_v17, %v107_v18  ;;  %v125_v22 = vmul.f32 %v374_v17, %v108_v19  ;;  %v110_v27 = vmin.f32 %v94_v24, 127.0 }
  0x27   :  { %v41_v30 = vmul.f32 %v40_v29, %v39_v28  ;;  %v126_v6 = vmul.f32 %v374_v17, %v109_v26 }
  0x28   :  { %280 = vmatpush3.bf16.xpose.msra.mxu0 %v279_v35  ;;  %v291_v16 = vpack.c.bf16 %v123_v10, %v122_v9  ;;  %v294_v25 = vpack.c.bf16 %v125_v22, %v124_v21  ;;  %v127_v31 = vmul.f32 %v374_v17, %v110_v27  ;;  %v44_v35 = vstv %s219_s28 }
  0x29   :  { %281 = vmatprep.subr.bf16.mxu0 %v318_v0  ;;  %v42_v32 = vmax.f32 %v41_v30, -256.0 }
  0x2a   :  { %v297_v33 = vpack.c.bf16 %v127_v31, %v126_v6 }
  0x2b   :  { %v43_v34 = vmin.f32 %v42_v32, 127.0 }
  0x2d   :  { %v45_v36 = vmul.f32 %v44_v35, %v43_v34 }
  0x30   :  { %283 = vmatpush3.bf16.xpose.msra.mxu0 %v282_v46 }
  0x31   :  { %284 = vmatprep.subr.bf16.mxu0 %v318_v0 }
  0x38   :  { %286 = vmatpush3.bf16.xpose.msra.mxu0 %v285_v55 }
  0x39   :  { %287 = vmatprep.subr.bf16.mxu0 %v318_v0 }
  0x40   :  { %289 = vmatpush3.bf16.xpose.msra.mxu0 %v288_v4 }
  0x41   :  { %290 = vmatprep.subr.bf16.mxu0 %v318_v0 }
  0x48   :  { %292 = vmatpush3.bf16.xpose.msra.mxu0 %v291_v16 }
  0x49   :  { %293 = vmatprep.subr.bf16.mxu0 %v318_v0 }
  0x50   :  { %295 = vmatpush3.bf16.xpose.msra.mxu0 %v294_v25 }
  0x51   :  { %296 = vmatprep.subr.bf16.mxu0 %v318_v0 }
  0x58   :  { %298 = vmatpush3.bf16.xpose.msra.mxu0 %v297_v33 }
  0x5f   :  { %273 = vmatmul.mubr.f32.vlgmr.msra.gmra.mrb[0].mxu0 %v45_v36 }
 0x132   :  { %v195_v38 = vpop.f32.mrb[0].mxu0 }
 0x133   :  { %v212_v39 = vadd.f32 %v222_v37, %v195_v38  ;;  %v274_v40 = vpop.f32.mrb[1].mxu0 }
 0x135   :  { %213 = vst [vmem:[%s454_s4] sm:$0xff] %v212_v39 }
 0x136   :  { %218 = vsyncpa [#allocation4], 1 }

</bundles_post_ra>
